<compile_context>
chip_gen: v7x
topology: tpu7x:2x2x1
jax: 0.10.0
libtpu: 0.0.40
codegen_flags: <defaults>
</compile_context>

<pallas_src>
from functools import partial

import jax
import jax.numpy as jnp
import numpy as np
from jax.experimental import pallas as pl
from jax.experimental.pallas import tpu as pltpu

NUM_CLASSES = 4
HIDDEN = 128      # fc1 output width
OUT_PAD = 128     # lane-dense padded logits width (>= NUM_CLASSES)


# ----------------------------- Pallas head kernel -----------------------------
def head_kernel(feat_ref, w_ref, b_ref, out_ref, *, hw, c):
    """Fused AdaptiveAvgPool2d((1,1)) + Flatten + (fc1 o fc2) for one batch tile.

    feat_ref : (tb, hw*c) bf16  channels-last rows, one sample per row
               (spatial position k of a sample lives in lanes [k*c, (k+1)*c))
    w_ref    : (c, 128)   bf16  fused fc1@fc2 weight (resident)
    b_ref    : (1, 128)   f32   fused bias (resident)
    out_ref  : (tb, 128)  f32   lane-dense logits slab
    """
    # AdaptiveAvgPool2d((1,1)) + Flatten: sum hw contiguous 2048-wide lane
    # groups in f32, then scale by 1/hw.  Contiguous lane slices at multiples
    # of 128 are free vreg-column selections (no strided loads, no reshapes).
    acc = feat_ref[:, 0:c].astype(jnp.float32)
    for k in range(1, hw):
        acc = acc + feat_ref[:, k * c:(k + 1) * c].astype(jnp.float32)
    pooled = (acc * (1.0 / hw)).astype(jnp.bfloat16)            # (tb, c)
    # Single bf16 x bf16 -> f32 MXU matmul (fc1 and fc2 folded; head is affine).
    out_ref[...] = (jnp.dot(pooled, w_ref[...], preferred_element_type=jnp.float32)
                    + b_ref[...])


def _choose_batch_tile(B, hw, C, target_tile_bytes=12 * 1024 * 1024):
    """Samples per grid step: multiple of 8 (or all of B when B <= 8).

    Aims for >= ~4 grid steps (pipelining / v7x megacore) while capping the
    bf16 feature tile at ~12 MiB (~24 MiB double-buffered, safe on v7x 64 MiB).
    """
    if B <= 8:
        return B                                   # single block; can't split below 8-row alignment
    row_bytes = hw * C * 2                         # bf16 bytes per sample
    cap = max(8, (target_tile_bytes // max(row_bytes, 1)) // 8 * 8)
    want = max(8, ((B + 3) // 4 + 7) // 8 * 8)     # ~B/4, rounded up to a multiple of 8
    return min(cap, want)


def head_forward(feat_bhwc, fc1w, fc1b, fc2w, fc2b):
    """feat_bhwc: (B, Hf, Wf, 2048) NHWC features -> (B, NUM_CLASSES) f32 logits."""
    B, Hf, Wf, C = feat_bhwc.shape
    hw = Hf * Wf
    Do = OUT_PAD

    # Fold the purely-affine fc1 -> fc2 chain into one lane-dense weight/bias.
    # (Valid because the reference head has no nonlinearity between fc1 and fc2.)
    w2p = jnp.zeros((fc1w.shape[1], Do), jnp.float32).at[:, :NUM_CLASSES].set(fc2w)
    b2p = jnp.zeros((1, Do), jnp.float32).at[:, :NUM_CLASSES].set(fc2b)
    w_eff = jnp.dot(fc1w, w2p).astype(jnp.bfloat16)              # (2048, 128)
    b_eff = jnp.dot(fc1b, w2p) + b2p                             # (1, 128) f32

    # Free reshape to a sample-major 2-D slab; rows keep the channels-last order.
    feat = feat_bhwc.reshape(B, hw * C)
    if feat.dtype != jnp.bfloat16:
        feat = feat.astype(jnp.bfloat16)   # no-op on the end-to-end path (backbone emits bf16)

    tb = _choose_batch_tile(B, hw, C)
    grid = (pl.cdiv(B, tb),)   # ragged last tile: OOB rows read garbage that only
                               # affects its own (discarded) output rows -- no jnp.pad.

    flops = 2 * B * C * Do + B * hw * C
    bytes_accessed = (B * hw * C * 2      # bf16 feature stream (dominant)
                      + C * Do * 2        # fused weight
                      + Do * 4            # fused bias
                      + B * Do * 4)       # logits slab

    kernel = partial(head_kernel, hw=hw, c=C)
    out = pl.pallas_call(
        kernel,
        out_shape=jax.ShapeDtypeStruct((B, Do), jnp.float32),
        grid_spec=pltpu.PrefetchScalarGridSpec(
            num_scalar_prefetch=0,
            grid=grid,
            in_specs=[
                pl.BlockSpec((tb, hw * C), lambda i: (i, 0)),   # feature tile (pipelined)
                pl.BlockSpec((C, Do), lambda i: (0, 0)),        # fused weight (resident)
                pl.BlockSpec((1, Do), lambda i: (0, 0)),        # fused bias (resident)
            ],
            out_specs=pl.BlockSpec((tb, Do), lambda i: (i, 0)),
        ),
        compiler_params=pltpu.CompilerParams(
            dimension_semantics=("parallel",),
            vmem_limit_bytes=40 * 1024 * 1024,   # ~24 MiB footprint + headroom; safe on v7x (64 MiB)
        ),
        cost_estimate=pl.CostEstimate(
            flops=flops, transcendentals=0, bytes_accessed=bytes_accessed),
    )(feat, w_eff, b_eff)
    return out[:, :NUM_CLASSES]


# ------------------ ResNet50 backbone (plain JAX glue, NHWC, bf16) -------------
# TODO(synk): the ResNet50 conv/maxpool stack stays in plain JAX lax convs (not
# hand-written Pallas convs); eval-mode BatchNorm is folded into conv weights,
# and pretrained ImageNet weights cannot be loaded in-script, so deterministic
# random init is used instead.

def conv_bias(x, wb, stride=1, padding=0):
    w, b = wb
    y = jax.lax.conv_general_dilated(
        x, w,
        window_strides=(stride, stride),
        padding=[(padding, padding), (padding, padding)],
        dimension_numbers=("NHWC", "HWIO", "NHWC"))
    return y + b


def maxpool_nhwc(x, k=3, s=2, p=1):
    return jax.lax.reduce_window(
        x, jnp.asarray(-jnp.inf, x.dtype), jax.lax.max,
        (1, k, k, 1), (1, s, s, 1),
        [(0, 0), (p, p), (p, p), (0, 0)])


class ParamGen:
    def __init__(self, seed):
        self._key = jax.random.PRNGKey(seed)

    def take(self, shape):
        self._key, sub = jax.random.split(self._key)
        fan_in = int(np.prod(shape[1:])) if len(shape) > 1 else int(shape[0])
        w = jax.random.normal(sub, shape, jnp.float32) / np.sqrt(max(fan_in, 1))
        return w.astype(jnp.float32)


def bn_params(c):
    # eval-mode running stats (identity; pretrained stats unavailable in-script)
    return (jnp.ones((c,), jnp.float32), jnp.zeros((c,), jnp.float32),
            jnp.zeros((c,), jnp.float32), jnp.ones((c,), jnp.float32))


def fold_bn_into_conv(w_oihw, bn, eps=1e-5):
    """Fold eval-mode BatchNorm into the preceding conv; return bf16 (HWIO w, bias)."""
    gamma, beta, mean, var = bn
    scale = gamma * jax.lax.rsqrt(var + eps)
    w = w_oihw * scale[:, None, None, None]
    bias = beta - mean * scale
    return (jnp.transpose(w, (2, 3, 1, 0)).astype(jnp.bfloat16),
            bias.astype(jnp.bfloat16))


def make_bottleneck(gen, in_c, planes, stride):
    p = {
        "conv1": fold_bn_into_conv(gen.take((planes, in_c, 1, 1)), bn_params(planes)),
        "conv2": fold_bn_into_conv(gen.take((planes, planes, 3, 3)), bn_params(planes)),
        "conv3": fold_bn_into_conv(gen.take((planes * 4, planes, 1, 1)), bn_params(planes * 4)),
        "stride": stride,
        "down": None,
    }
    if stride != 1 or in_c != planes * 4:
        p["down"] = fold_bn_into_conv(gen.take((planes * 4, in_c, 1, 1)), bn_params(planes * 4))
    return p


def make_layer(gen, in_c, planes, blocks, stride):
    params = [make_bottleneck(gen, in_c, planes, stride)]
    for _ in range(blocks - 1):
        params.append(make_bottleneck(gen, planes * 4, planes, 1))
    return params


def build_params(seed=0):
    gen = ParamGen(seed)
    p = {}
    p["stem"] = fold_bn_into_conv(gen.take((64, 3, 7, 7)), bn_params(64))
    p["layer1"] = make_layer(gen, 64, 64, 3, 1)
    p["layer2"] = make_layer(gen, 256, 128, 4, 2)
    p["layer3"] = make_layer(gen, 512, 256, 6, 2)
    p["layer4"] = make_layer(gen, 1024, 512, 3, 2)
    # fc weights stored as (in, out); head folding/padding happens in head_forward.
    p["fc1w"] = gen.take((2048, HIDDEN))
    p["fc1b"] = gen.take((1, HIDDEN))
    p["fc2w"] = gen.take((HIDDEN, NUM_CLASSES))
    p["fc2b"] = gen.take((1, NUM_CLASSES))
    return p


def bottleneck_forward(x, p):
    identity = x
    out = jax.nn.relu(conv_bias(x, p["conv1"], stride=1, padding=0))
    out = jax.nn.relu(conv_bias(out, p["conv2"], stride=p["stride"], padding=1))
    out = conv_bias(out, p["conv3"], stride=1, padding=0)
    if p["down"] is not None:
        identity = conv_bias(x, p["down"], stride=p["stride"], padding=0)
    return jax.nn.relu(out + identity)


def backbone_forward(x_nchw, p):
    # NCHW -> NHWC once, and run the whole backbone in bf16 so the head kernel
    # receives bf16 channels-last features directly (no wrapper cast pass).
    x = jnp.transpose(x_nchw.astype(jnp.bfloat16), (0, 2, 3, 1))
    out = jax.nn.relu(conv_bias(x, p["stem"], stride=2, padding=3))
    out = maxpool_nhwc(out)
    for layer in ("layer1", "layer2", "layer3", "layer4"):
        for bp in p[layer]:
            out = bottleneck_forward(out, bp)
    return out                                             # (B, Hf, Wf, 2048) bf16


def trashnet_forward(x, p):
    feat = backbone_forward(x, p)                          # (B, Hf, Wf, 2048) bf16
    return head_forward(feat, p["fc1w"], p["fc1b"], p["fc2w"], p["fc2b"])


def head_reference(feat_bhwc, fc1w, fc1b, fc2w, fc2b):
    """Pure-JAX f32 reference: avgpool -> flatten -> fc1 -> fc2."""
    B, Hf, Wf, C = feat_bhwc.shape
    pooled = feat_bhwc.reshape(B, Hf * Wf, C).mean(axis=1)
    h = pooled @ fc1w + fc1b
    return h @ fc2w + fc2b


if __name__ == "__main__":
    params = build_params(seed=0)

    key = jax.random.PRNGKey(0)
    k1, k2, k3 = jax.random.split(key, 3)

    head_fn = jax.jit(lambda f: head_forward(
        f, params["fc1w"], params["fc1b"], params["fc2w"], params["fc2b"]))

    # (1) Head kernel vs pure-JAX f32 reference: single-tile path (B=2, 2x2 spatial).
    feat_small = jax.random.normal(k1, (2, 2, 2, 2048), jnp.float32).astype(jnp.bfloat16)
    got = jax.block_until_ready(head_fn(feat_small))
    want = head_reference(feat_small.astype(jnp.float32), params["fc1w"], params["fc1b"],
                          params["fc2w"], params["fc2b"])
    np.testing.assert_allclose(np.asarray(got), np.asarray(want), rtol=5e-2, atol=2e-1)

    # (2) Head kernel: multi-step grid with a ragged (non-dividing) last batch tile.
    feat_big = jax.random.normal(k2, (20, 2, 2, 2048), jnp.float32).astype(jnp.bfloat16)
    got_big = jax.block_until_ready(head_fn(feat_big))
    want_big = head_reference(feat_big.astype(jnp.float32), params["fc1w"], params["fc1b"],
                              params["fc2w"], params["fc2b"])
    np.testing.assert_allclose(np.asarray(got_big), np.asarray(want_big), rtol=5e-2, atol=2e-1)

    # (3) Full forward: 3-channel input, 64x64 spatial -> 2x2x2048 backbone features.
    x = jax.random.normal(k3, (2, 3, 64, 64), jnp.float32)
    fwd = jax.jit(lambda xx: trashnet_forward(xx, params))
    out = jax.block_until_ready(fwd(x))

    assert out.shape == (2, NUM_CLASSES), out.shape
    assert out.dtype == jnp.float32
    assert bool(jnp.all(jnp.isfinite(out)))
    print("KERNEL_OK")
</pallas_src>

<mosaic_0001>
module attributes {stable_mosaic.version = 11 : i64} {
  func.func @head_kernel(%arg0: i32, %arg1: memref<2x8192xbf16, #tpu.memory_space<vmem>>, %arg2: memref<2048x128xbf16, #tpu.memory_space<vmem>>, %arg3: memref<1x128xf32, #tpu.memory_space<vmem>>, %arg4: memref<2x128xf32, #tpu.memory_space<vmem>>) attributes {dimension_semantics = [#tpu.dimension_semantics<parallel>], iteration_bounds = array<i64: 1>, scalar_prefetch = 0 : i64, scratch_operands = 0 : i64, tpu.core_type = #tpu.core_type<tc>, window_params = [{transform_indices = @transform_0, window_bounds = array<i64: 2, 8192>}, {pipeline_mode = #tpu.pipeline_mode<synchronous>, transform_indices = @transform_1, window_bounds = array<i64: 2048, 128>}, {pipeline_mode = #tpu.pipeline_mode<synchronous>, transform_indices = @transform_2, window_bounds = array<i64: 1, 128>}, {transform_indices = @transform_3, window_bounds = array<i64: 2, 128>}]} {
    %c0 = arith.constant 0 : index
    %c0_0 = arith.constant 0 : index
    %0 = vector.load %arg1[%c0, %c0_0] : memref<2x8192xbf16, #tpu.memory_space<vmem>>, vector<2x2048xbf16>
    %1 = arith.extf %0 : vector<2x2048xbf16> to vector<2x2048xf32>
    %c0_1 = arith.constant 0 : index
    %c2048 = arith.constant 2048 : index
    %2 = vector.load %arg1[%c0_1, %c2048] : memref<2x8192xbf16, #tpu.memory_space<vmem>>, vector<2x2048xbf16>
    %3 = arith.extf %2 : vector<2x2048xbf16> to vector<2x2048xf32>
    %4 = arith.addf %1, %3 : vector<2x2048xf32>
    %c0_2 = arith.constant 0 : index
    %c4096 = arith.constant 4096 : index
    %5 = vector.load %arg1[%c0_2, %c4096] : memref<2x8192xbf16, #tpu.memory_space<vmem>>, vector<2x2048xbf16>
    %6 = arith.extf %5 : vector<2x2048xbf16> to vector<2x2048xf32>
    %7 = arith.addf %4, %6 : vector<2x2048xf32>
    %c0_3 = arith.constant 0 : index
    %c6144 = arith.constant 6144 : index
    %8 = vector.load %arg1[%c0_3, %c6144] : memref<2x8192xbf16, #tpu.memory_space<vmem>>, vector<2x2048xbf16>
    %9 = arith.extf %8 : vector<2x2048xbf16> to vector<2x2048xf32>
    %10 = arith.addf %7, %9 : vector<2x2048xf32>
    %cst = arith.constant 2.500000e-01 : f32
    %11 = vector.broadcast %cst : f32 to vector<2x2048xf32>
    %12 = arith.mulf %10, %11 : vector<2x2048xf32>
    %13 = arith.truncf %12 : vector<2x2048xf32> to vector<2x2048xbf16>
    %c0_4 = arith.constant 0 : index
    %c0_5 = arith.constant 0 : index
    %14 = vector.load %arg2[%c0_4, %c0_5] : memref<2048x128xbf16, #tpu.memory_space<vmem>>, vector<2048x128xbf16>
    %cst_6 = arith.constant dense<0.000000e+00> : vector<2x128xf32>
    %15 = tpu.matmul %13, %14, %cst_6 {dimension_numbers = #tpu.dot_dimension_numbers<[1], [0], [0], [1], [0, 0, 1, 1], [], []>} : vector<2x2048xbf16>, vector<2048x128xbf16>, vector<2x128xf32> -> vector<2x128xf32>
    %c0_7 = arith.constant 0 : index
    %c0_8 = arith.constant 0 : index
    %16 = vector.load %arg3[%c0_7, %c0_8] : memref<1x128xf32, #tpu.memory_space<vmem>>, vector<1x128xf32>
    %17 = vector.broadcast %16 : vector<1x128xf32> to vector<2x128xf32>
    %18 = arith.addf %15, %17 : vector<2x128xf32>
    %c0_9 = arith.constant 0 : index
    %c0_10 = arith.constant 0 : index
    %19 = vector.load %arg4[%c0_9, %c0_10] : memref<2x128xf32, #tpu.memory_space<vmem>>, vector<2x128xf32>
    tpu.vector_store %arg4[%c0_9, %c0_10], %18 {strides = array<i32>} : memref<2x128xf32, #tpu.memory_space<vmem>>, vector<2x128xf32>,
    return
  }
  func.func @transform_0(%arg0: i32) -> (i32, i32) {
    %c0_i32 = arith.constant 0 : i32
    %c0_i32_0 = arith.constant 0 : i32
    return %arg0, %c0_i32 : i32, i32
  }
  func.func @transform_1(%arg0: i32) -> (i32, i32) {
    %c0_i32 = arith.constant 0 : i32
    %c0_i32_0 = arith.constant 0 : i32
    %c0_i32_1 = arith.constant 0 : i32
    return %c0_i32, %c0_i32_0 : i32, i32
  }
  func.func @transform_2(%arg0: i32) -> (i32, i32) {
    %c0_i32 = arith.constant 0 : i32
    %c0_i32_0 = arith.constant 0 : i32
    %c0_i32_1 = arith.constant 0 : i32
    return %c0_i32, %c0_i32_0 : i32, i32
  }
  func.func @transform_3(%arg0: i32) -> (i32, i32) {
    %c0_i32 = arith.constant 0 : i32
    %c0_i32_0 = arith.constant 0 : i32
    return %arg0, %c0_i32 : i32, i32
  }
}

</mosaic_0001>

<bundles_post_ra>
// kernel: _lambda_.1
= control target key start
LH: loop header
LB: loop body
LE: loop exit
PB: predicated region body
PF: predicated region fallthrough
CT: control target
= control target key end

     0   :  { %v64_v31 = vlaneseq  ;;  %v1985_v48 = vmov 1983009808   ;;  %s2464_s0 = inlined_call_operand.vmem [shape: bf16[2,8192], index: 0, kind: input, shape index: {}]   ;;  %s2465_s1 = inlined_call_operand.vmem [shape: bf16[2048,128], index: 1, kind: input, shape index: {}]   ;;  %s2466_s2 = inlined_call_operand.vmem [shape: f32[1,128], index: 2, kind: input, shape index: {}]   ;;  %s2467_s3 = inlined_call_operand.hbm [shape: f32[2,128], index: 3, kind: output, shape index: {}]  }
   0x1   :  { %v1833_v0 = vld [vmem:[%s2465_s1 + $0x40] sm:$0xff]   ;;  %v1837_v4 = vld [vmem:[%s2465_s1 + $0x48] sm:$0xff]   ;;  %v1841_v8 = vld [vmem:[%s2465_s1 + $0x50] sm:$0xff]   ;;  %v62_v49 = vunpack.c.l.s4 %v1985_v48 }
   0x2   :  { %v1834_v1 = vld [vmem:[%s2465_s1 + $0xc0] sm:$0xff]   ;;  %1655 = vmatprep.subr.bf16.mxu0 %v1833_v0  ;;  %v1838_v5 = vld [vmem:[%s2465_s1 + $0xc8] sm:$0xff]   ;;  %v1842_v9 = vld [vmem:[%s2465_s1 + $0xd0] sm:$0xff]   ;;  %v65_v44 = vshrl.u32 %v64_v31, 7 }
   0x3   :  { %v1835_v2 = vld [vmem:[%s2465_s1] sm:$0xff]   ;;  %1677 = vmatprep.subr.bf16.mxu1 %v1834_v1  ;;  %v1839_v6 = vld [vmem:[%s2465_s1 + $0x8] sm:$0xff]   ;;  %v1843_v10 = vld [vmem:[%s2465_s1 + $0x10] sm:$0xff]   ;;  %v63_v53 = vunpack.c.0.s8 %v62_v49 }
   0x4   :  { %v1836_v3 = vld [vmem:[%s2465_s1 + $0x80] sm:$0xff]   ;;  %1656 = vmatpush3.bf16.msra.mxu0 %v1835_v2  ;;  %v1840_v7 = vld [vmem:[%s2465_s1 + $0x88] sm:$0xff]   ;;  %v1844_v11 = vld [vmem:[%s2465_s1 + $0x90] sm:$0xff]  }
   0x5   :  { %1678 = vmatpush3.bf16.msra.mxu1 %v1836_v3  ;;  %1657 = vmatprep.subr.bf16.mxu0 %v1837_v4  ;;  %v1845_v12 = vld [vmem:[%s2465_s1 + $0x58] sm:$0xff]   ;;  %v1849_v16 = vld [vmem:[%s2465_s1 + $0x60] sm:$0xff]   ;;  %v1853_v20 = vld [vmem:[%s2465_s1 + $0x68] sm:$0xff]   ;;  %v2121_v56 = vsub.s32 %v63_v53, %v65_v44 }
   0x6   :  { %1679 = vmatprep.subr.bf16.mxu1 %v1838_v5  ;;  %v1846_v13 = vld [vmem:[%s2465_s1 + $0xd8] sm:$0xff]   ;;  %v1850_v17 = vld [vmem:[%s2465_s1 + $0xe0] sm:$0xff]   ;;  %v1854_v21 = vld [vmem:[%s2465_s1 + $0xe8] sm:$0xff]  }
   0x7   :  { %v1847_v14 = vld [vmem:[%s2465_s1 + $0x18] sm:$0xff]   ;;  %v1851_v18 = vld [vmem:[%s2465_s1 + $0x20] sm:$0xff]   ;;  %v1855_v22 = vld [vmem:[%s2465_s1 + $0x28] sm:$0xff]  }
   0x8   :  { %1658 = vmatpush3.bf16.msra.mxu0 %v1839_v6  ;;  %v1848_v15 = vld [vmem:[%s2465_s1 + $0x98] sm:$0xff]   ;;  %v1852_v19 = vld [vmem:[%s2465_s1 + $0xa0] sm:$0xff]   ;;  %v1856_v23 = vld [vmem:[%s2465_s1 + $0xa8] sm:$0xff]  }
   0x9   :  { %1680 = vmatpush3.bf16.msra.mxu1 %v1840_v7  ;;  %1659 = vmatprep.subr.bf16.mxu0 %v1841_v8  ;;  %v1857_v24 = vld [vmem:[%s2465_s1 + $0x70] sm:$0xff]   ;;  %v1861_v28 = vld [vmem:[%s2465_s1 + $0x78] sm:$0xff]   ;;  %v16_v33 = vld [vmem:[%s2464_s0] sm:$0xff] }
   0xa   :  { %1681 = vmatprep.subr.bf16.mxu1 %v1842_v9  ;;  %v1858_v25 = vld [vmem:[%s2465_s1 + $0xf0] sm:$0xff]   ;;  %v1862_v29 = vld [vmem:[%s2465_s1 + $0xf8] sm:$0xff]   ;;  %v32_v35 = vld [vmem:[%s2464_s0 + $0x20] sm:$0xff]  ;;  %v18_v36 = vunpack.c.l.bf16 %v16_v33  ;;  %v19_v37 = vunpack.c.h.bf16 %v16_v33 }
   0xb   :  { %v1859_v26 = vld [vmem:[%s2465_s1 + $0x30] sm:$0xff]   ;;  %v1863_v30 = vld [vmem:[%s2465_s1 + $0x38] sm:$0xff]   ;;  %v34_v41 = vunpack.c.l.bf16 %v32_v35  ;;  %v35_v42 = vunpack.c.h.bf16 %v32_v35  ;;  %v1865_v45 = vld [vmem:[%s2465_s1 + $0x140] sm:$0xff]  }
   0xc   :  { %1660 = vmatpush3.bf16.msra.mxu0 %v1843_v10  ;;  %v1860_v27 = vld [vmem:[%s2465_s1 + $0xb0] sm:$0xff]   ;;  %v1864_v32 = vld [vmem:[%s2465_s1 + $0xb8] sm:$0xff]   ;;  %v1866_v50 = vld [vmem:[%s2465_s1 + $0x1c0] sm:$0xff]  }
   0xd   :  { %1682 = vmatpush3.bf16.msra.mxu1 %v1844_v11  ;;  %1661 = vmatprep.subr.bf16.mxu0 %v1845_v12  ;;  %v22_v34 = vld [vmem:[%s2464_s0 + $0x10] sm:$0xff]  ;;  %v1867_v3 = vld [vmem:[%s2465_s1 + $0x100] sm:$0xff]   ;;  %v1869_v10 = vld [vmem:[%s2465_s1 + $0x148] sm:$0xff]  }
   0xe   :  { %1683 = vmatprep.subr.bf16.mxu1 %v1846_v13  ;;  %v24_v38 = vunpack.c.l.bf16 %v22_v34  ;;  %v25_v39 = vunpack.c.h.bf16 %v22_v34  ;;  %v42_v40 = vld [vmem:[%s2464_s0 + $0x30] sm:$0xff]  ;;  %v1868_v8 = vld [vmem:[%s2465_s1 + $0x180] sm:$0xff]   ;;  %v1870_v13 = vld [vmem:[%s2465_s1 + $0x1c8] sm:$0xff]  }
   0xf   :  { %v44_v43 = vunpack.c.l.bf16 %v42_v40  ;;  %v45_v47 = vunpack.c.h.bf16 %v42_v40  ;;  %v1886_v31 = vld [vmem:[%s2465_s1 + $0x1e8] sm:$0xff]   ;;  %v1889_v34 = vld [vmem:[%s2465_s1 + $0x170] sm:$0xff]   ;;  %v1895_v40 = vld [vmem:[%s2465_s1 + $0x138] sm:$0xff]  }
  0x10   :  { %1662 = vmatpush3.bf16.msra.mxu0 %v1847_v14  ;;  %v28_v46 = vadd.f32 %v24_v38, %v18_v36  ;;  %v29_v51 = vadd.f32 %v25_v39, %v19_v37  ;;  %v1888_v33 = vld [vmem:[%s2465_s1 + $0x1a8] sm:$0xff]   ;;  %v1890_v35 = vld [vmem:[%s2465_s1 + $0x1f0] sm:$0xff]   ;;  %v1893_v38 = vld [vmem:[%s2465_s1 + $0x178] sm:$0xff]  }
  0x11   :  { %1684 = vmatpush3.bf16.msra.mxu1 %v1848_v15  ;;  %1663 = vmatprep.subr.bf16.mxu0 %v1849_v16  ;;  %v1871_v15 = vld [vmem:[%s2465_s1 + $0x108] sm:$0xff]   ;;  %v1891_v36 = vld [vmem:[%s2465_s1 + $0x130] sm:$0xff]   ;;  %v1894_v39 = vld [vmem:[%s2465_s1 + $0x1f8] sm:$0xff]  }
  0x12   :  { %1685 = vmatprep.subr.bf16.mxu1 %v1850_v17  ;;  %v38_v52 = vadd.f32 %v34_v41, %v28_v46  ;;  %v39_v54 = vadd.f32 %v35_v42, %v29_v51  ;;  %v1872_v17 = vld [vmem:[%s2465_s1 + $0x188] sm:$0xff]   ;;  %v1892_v37 = vld [vmem:[%s2465_s1 + $0x1b0] sm:$0xff]   ;;  %v1896_v41 = vld [vmem:[%s2465_s1 + $0x1b8] sm:$0xff]  }
  0x13   :  { %v1897_v42 = vld [vmem:[%s2465_s1 + $0x240] sm:$0xff]   ;;  %v1901_v48 = vld [vmem:[%s2465_s1 + $0x248] sm:$0xff]   ;;  %v1906_v53 = vld [vmem:[%s2465_s1 + $0x2d0] sm:$0xff]  }
  0x14   :  { %1664 = vmatpush3.bf16.msra.mxu0 %v1851_v18  ;;  %v48_v55 = vadd.f32 %v44_v43, %v38_v52  ;;  %v49_v57 = vadd.f32 %v45_v47, %v39_v54  ;;  %v1873_v18 = vld [vmem:[%s2465_s1 + $0x150] sm:$0xff]   ;;  %v1898_v43 = vld [vmem:[%s2465_s1 + $0x2c0] sm:$0xff]   ;;  %v1902_v49 = vld [vmem:[%s2465_s1 + $0x2c8] sm:$0xff]  }
  0x15   :  { %1686 = vmatpush3.bf16.msra.mxu1 %v1852_v19  ;;  %1665 = vmatprep.subr.bf16.mxu0 %v1853_v20  ;;  %v1874_v19 = vld [vmem:[%s2465_s1 + $0x1d0] sm:$0xff]   ;;  %v1900_v46 = vld [vmem:[%s2465_s1 + $0x280] sm:$0xff]   ;;  %v1904_v51 = vld [vmem:[%s2465_s1 + $0x288] sm:$0xff]  }
  0x16   :  { %1687 = vmatprep.subr.bf16.mxu1 %v1854_v21  ;;  %v52_v58 = vmul.f32 0.25, %v48_v55  ;;  %v53_v59 = vmul.f32 0.25, %v49_v57  ;;  %v1875_v20 = vld [vmem:[%s2465_s1 + $0x110] sm:$0xff]   ;;  %v1909_v57 = vld [vmem:[%s2465_s1 + $0x258] sm:$0xff]  }
  0x17   :  { %v1876_v21 = vld [vmem:[%s2465_s1 + $0x190] sm:$0xff]  }
  0x18   :  { %1666 = vmatpush3.bf16.msra.mxu0 %v1855_v22  ;;  %v67_v60 = vrot.slane %v52_v58, %v2121_v56  ;;  %v60_v61 = vcombine.high %v52_v58, %v52_v58  ;;  %v2125_v62 = vrot.slane %v53_v59, %v2121_v56  ;;  %v77_v63 = vcombine.high %v53_v59, %v53_v59  ;;  %v1877_v22 = vld [vmem:[%s2465_s1 + $0x158] sm:$0xff]   ;;  %v1905_v52 = vld [vmem:[%s2465_s1 + $0x250] sm:$0xff]  }
  0x19   :  { %1688 = vmatpush3.bf16.msra.mxu1 %v1856_v23  ;;  %1667 = vmatprep.subr.bf16.mxu0 %v1857_v24  ;;  %v1878_v23 = vld [vmem:[%s2465_s1 + $0x1d8] sm:$0xff]   ;;  %v1907_v54 = vld [vmem:[%s2465_s1 + $0x210] sm:$0xff]  }
  0x1a   :  { %1689 = vmatprep.subr.bf16.mxu1 %v1858_v25  ;;  %v75_v0 = vcombine.high %v67_v60, %v67_v60  ;;  %v74_v1 = vrot.slane %v60_v61, %v2121_v56  ;;  %v144_v2 = vpack.c.bf16 %v67_v60, %v67_v60  ;;  %v92_v4 = vcombine.high %v2125_v62, %v2125_v62  ;;  %v1879_v24 = vld [vmem:[%s2465_s1 + $0x118] sm:$0xff]   ;;  %v1908_v55 = vld [vmem:[%s2465_s1 + $0x290] sm:$0xff]   ;;  %v1913_v61 = vld [vmem:[%s2465_s1 + $0x260] sm:$0xff]  }
  0x1b   :  { %v2134_v5 = vrot.slane %v77_v63, %v2121_v56  ;;  %v1880_v25 = vld [vmem:[%s2465_s1 + $0x198] sm:$0xff]   ;;  %v148_v44 = vpack.c.bf16 %v2125_v62, %v2125_v62  ;;  %v1914_v62 = vld [vmem:[%s2465_s1 + $0x2e0] sm:$0xff]  }
  0x1c   :  { %1668 = vmatpush3.bf16.msra.mxu0 %v1859_v26  ;;  %v145_v6 = vpack.c.bf16 %v75_v0, %v75_v0  ;;  %v76_v7 = vcombine.high %v74_v1, %v74_v1  ;;  %v146_v9 = vpack.c.bf16 %v74_v1, %v74_v1  ;;  %v149_v14 = vpack.c.bf16 %v92_v4, %v92_v4  ;;  %v1881_v26 = vld [vmem:[%s2465_s1 + $0x160] sm:$0xff]   ;;  %v1910_v58 = vld [vmem:[%s2465_s1 + $0x2d8] sm:$0xff]   ;;  %v1917_v1 = vld [vmem:[%s2465_s1 + $0x268] sm:$0xff]  }
  0x1d   :  { %1690 = vmatpush3.bf16.msra.mxu1 %v1860_v27  ;;  %1669 = vmatprep.subr.bf16.mxu0 %v1861_v28  ;;  %v93_v11 = vcombine.high %v2134_v5, %v2134_v5  ;;  %v1882_v27 = vld [vmem:[%s2465_s1 + $0x1e0] sm:$0xff]   ;;  %v150_v47 = vpack.c.bf16 %v2134_v5, %v2134_v5  ;;  %v1911_v59 = vld [vmem:[%s2465_s1 + $0x218] sm:$0xff]  }
  0x1e   :  { %1691 = vmatprep.subr.bf16.mxu1 %v1862_v29  ;;  %1223 = vmatprep.mubr.bf16.mxu0 %v145_v6  ;;  %v147_v12 = vpack.c.bf16 %v76_v7, %v76_v7  ;;  %v1883_v28 = vld [vmem:[%s2465_s1 + $0x120] sm:$0xff]   ;;  %v1912_v60 = vld [vmem:[%s2465_s1 + $0x298] sm:$0xff]   ;;  %v33_v7 = vld [vmem:[%s2464_s0 + $0x28] sm:$0xff] }
  0x1f   :  { %v151_v16 = vpack.c.bf16 %v93_v11, %v93_v11  ;;  %v1884_v29 = vld [vmem:[%s2465_s1 + $0x1a0] sm:$0xff]   ;;  %v23_v4 = vld [vmem:[%s2464_s0 + $0x18] sm:$0xff]  ;;  %v1919_v11 = vld [vmem:[%s2465_s1 + $0x228] sm:$0xff]  }
  0x20   :  { %1670 = vmatpush3.bf16.msra.mxu0 %v1863_v30  ;;  %1263 = vmatprep.mubr.bf16.mxu1 %v147_v12  ;;  %v1885_v30 = vld [vmem:[%s2465_s1 + $0x168] sm:$0xff]   ;;  %v1915_v63 = vld [vmem:[%s2465_s1 + $0x220] sm:$0xff]   ;;  %v26_v6 = vunpack.c.l.bf16 %v23_v4  ;;  %v36_v12 = vunpack.c.l.bf16 %v33_v7 }
  0x21   :  { %1692 = vmatpush3.bf16.msra.mxu1 %v1864_v32  ;;  %1699 = vmatprep.subr.bf16.mxu0 %v1865_v45  ;;  %v1887_v32 = vld [vmem:[%s2465_s1 + $0x128] sm:$0xff]   ;;  %v1899_v45 = vld [vmem:[%s2465_s1 + $0x200] sm:$0xff]  }
  0x22   :  { %1721 = vmatprep.subr.bf16.mxu1 %v1866_v50  ;;  %v1903_v50 = vld [vmem:[%s2465_s1 + $0x208] sm:$0xff]   ;;  %v1916_v0 = vld [vmem:[%s2465_s1 + $0x2a0] sm:$0xff]  }
  0x23   :  { %1224 = vmatmul.mubr.bf16.vlgmr.msra.gmra.mrb[0].mxu0 %v144_v2  ;;  %v1918_v2 = vld [vmem:[%s2465_s1 + $0x2e8] sm:$0xff]  }
  0x24   :  { %1700 = vmatpush3.bf16.msra.mxu0 %v1867_v3  ;;  %1264 = vmatmul.mubr.bf16.vlgmr.msra.gmra.mrb[0].mxu1 %v146_v9  ;;  %v17_v3 = vld [vmem:[%s2464_s0 + $0x8] sm:$0xff] }
  0x25   :  { %1701 = vmatprep.subr.bf16.mxu0 %v1869_v10  ;;  %1722 = vmatpush3.bf16.msra.mxu1 %v1868_v8  ;;  %v20_v5 = vunpack.c.l.bf16 %v17_v3  ;;  %v43_v8 = vld [vmem:[%s2464_s0 + $0x38] sm:$0xff]  ;;  %v21_v9 = vunpack.c.h.bf16 %v17_v3  ;;  %v27_v10 = vunpack.c.h.bf16 %v23_v4  ;;  %v1947_v3 = vld [vmem:[%s2465_s1 + $0x320] sm:$0xff]   ;;  %v1949_v4 = vld [vmem:[%s2465_s1 + $0x368] sm:$0xff]  }
  0x26   :  { %1303 = vmatprep.mubr.bf16.mxu0 %v149_v14  ;;  %1723 = vmatprep.subr.bf16.mxu1 %v1870_v13  ;;  %v37_v13 = vunpack.c.h.bf16 %v33_v7  ;;  %v1921_v14 = vld [vmem:[%s2465_s1 + $0x270] sm:$0xff]  }
  0x27   :  { %1343 = vmatprep.mubr.bf16.mxu1 %v151_v16  ;;  %v46_v16 = vunpack.c.l.bf16 %v43_v8 }
  0x28   :  { %1702 = vmatpush3.bf16.msra.mxu0 %v1871_v15  ;;  %v30_v15 = vadd.f32 %v26_v6, %v20_v5  ;;  %v1948_v5 = vld [vmem:[%s2465_s1 + $0x3a0] sm:$0xff]  }
  0x29   :  { %1703 = vmatprep.subr.bf16.mxu0 %v1873_v18  ;;  %1724 = vmatpush3.bf16.msra.mxu1 %v1872_v17  ;;  %v31_v17 = vadd.f32 %v27_v10, %v21_v9  ;;  %v47_v18 = vunpack.c.h.bf16 %v43_v8 }
  0x2a   :  { %1725 = vmatprep.subr.bf16.mxu1 %v1874_v19  ;;  %v1920_v19 = vld [vmem:[%s2465_s1 + $0x2a8] sm:$0xff]  }
  0x2c   :  { %1704 = vmatpush3.bf16.msra.mxu0 %v1875_v20  ;;  %v1922_v20 = vld [vmem:[%s2465_s1 + $0x2f0] sm:$0xff]  }
  0x2d   :  { %1705 = vmatprep.subr.bf16.mxu0 %v1877_v22  ;;  %1726 = vmatpush3.bf16.msra.mxu1 %v1876_v21  ;;  %v40_v21 = vadd.f32 %v36_v12, %v30_v15  ;;  %v41_v22 = vadd.f32 %v37_v13, %v31_v17 }
  0x2e   :  { %1727 = vmatprep.subr.bf16.mxu1 %v1878_v23  ;;  %v1923_v23 = vld [vmem:[%s2465_s1 + $0x230] sm:$0xff]  }
  0x30   :  { %1706 = vmatpush3.bf16.msra.mxu0 %v1879_v24  ;;  %v1925_v24 = vld [vmem:[%s2465_s1 + $0x278] sm:$0xff]  }
  0x31   :  { %1707 = vmatprep.subr.bf16.mxu0 %v1881_v26  ;;  %1728 = vmatpush3.bf16.msra.mxu1 %v1880_v25  ;;  %v50_v25 = vadd.f32 %v46_v16, %v40_v21  ;;  %v51_v26 = vadd.f32 %v47_v18, %v41_v22 }
  0x32   :  { %1729 = vmatprep.subr.bf16.mxu1 %v1882_v27  ;;  %v1924_v27 = vld [vmem:[%s2465_s1 + $0x2b0] sm:$0xff]  }
  0x34   :  { %1708 = vmatpush3.bf16.msra.mxu0 %v1883_v28  ;;  %v1926_v28 = vld [vmem:[%s2465_s1 + $0x2f8] sm:$0xff]  }
  0x35   :  { %1709 = vmatprep.subr.bf16.mxu0 %v1885_v30  ;;  %1730 = vmatpush3.bf16.msra.mxu1 %v1884_v29  ;;  %v54_v29 = vmul.f32 0.25, %v50_v25  ;;  %v1927_v30 = vld [vmem:[%s2465_s1 + $0x238] sm:$0xff]  }
  0x36   :  { %1731 = vmatprep.subr.bf16.mxu1 %v1886_v31  ;;  %v55_v31 = vmul.f32 0.25, %v51_v26 }
  0x38   :  { %1710 = vmatpush3.bf16.msra.mxu0 %v1887_v32  ;;  %v101_v32 = vrot.slane %v54_v29, %v2121_v56 }
  0x39   :  { %1711 = vmatprep.subr.bf16.mxu0 %v1889_v34  ;;  %1732 = vmatpush3.bf16.msra.mxu1 %v1888_v33  ;;  %v94_v33 = vcombine.high %v54_v29, %v54_v29  ;;  %v1929_v34 = vld [vmem:[%s2465_s1 + $0x340] sm:$0xff]  }
  0x3a   :  { %1733 = vmatprep.subr.bf16.mxu1 %v1890_v35  ;;  %v1928_v35 = vld [vmem:[%s2465_s1 + $0x2b8] sm:$0xff]  }
  0x3c   :  { %1712 = vmatpush3.bf16.msra.mxu0 %v1891_v36  ;;  %v2342_v36 = vrot.slane %v55_v31, %v2121_v56 }
  0x3d   :  { %1713 = vmatprep.subr.bf16.mxu0 %v1893_v38  ;;  %1734 = vmatpush3.bf16.msra.mxu1 %v1892_v37  ;;  %v111_v37 = vcombine.high %v55_v31, %v55_v31  ;;  %v109_v38 = vcombine.high %v101_v32, %v101_v32 }
  0x3e   :  { %1735 = vmatprep.subr.bf16.mxu1 %v1894_v39  ;;  %v108_v39 = vrot.slane %v94_v33, %v2121_v56 }
  0x40   :  { %1714 = vmatpush3.bf16.msra.mxu0 %v1895_v40  ;;  %v1930_v40 = vld [vmem:[%s2465_s1 + $0x3c0] sm:$0xff]  }
  0x41   :  { %1743 = vmatprep.subr.bf16.mxu0 %v1897_v42  ;;  %1736 = vmatpush3.bf16.msra.mxu1 %v1896_v41  ;;  %v152_v41 = vpack.c.bf16 %v101_v32, %v101_v32  ;;  %v126_v42 = vcombine.high %v2342_v36, %v2342_v36 }
  0x42   :  { %1765 = vmatprep.subr.bf16.mxu1 %v1898_v43  ;;  %v2351_v43 = vrot.slane %v111_v37, %v2121_v56  ;;  %v1932_v56 = vld [vmem:[%s2465_s1 + $0x380] sm:$0xff]  }
  0x43   :  { %1304 = vmatmul.mubr.bf16.vlgmr.msra.gmra.mrb[4].mxu0 %v148_v44  ;;  %v153_v44 = vpack.c.bf16 %v109_v38, %v109_v38 }
  0x44   :  { %1744 = vmatpush3.bf16.msra.mxu0 %v1899_v45  ;;  %1344 = vmatmul.mubr.bf16.vlgmr.msra.gmra.mrb[4].mxu1 %v150_v47  ;;  %v110_v45 = vcombine.high %v108_v39, %v108_v39  ;;  %v154_v47 = vpack.c.bf16 %v108_v39, %v108_v39 }
  0x45   :  { %1745 = vmatprep.subr.bf16.mxu0 %v1901_v48  ;;  %1766 = vmatpush3.bf16.msra.mxu1 %v1900_v46  ;;  %v1931_v46 = vld [vmem:[%s2465_s1 + $0x300] sm:$0xff]   ;;  %v1933_v48 = vld [vmem:[%s2465_s1 + $0x348] sm:$0xff]  }
  0x46   :  { %1767 = vmatprep.subr.bf16.mxu1 %v1902_v49  ;;  %v127_v49 = vcombine.high %v2351_v43, %v2351_v43  ;;  %1383 = vmatprep.mubr.bf16.mxu0 %v153_v44 }
  0x48   :  { %1746 = vmatpush3.bf16.msra.mxu0 %v1903_v50  ;;  %v155_v50 = vpack.c.bf16 %v110_v45, %v110_v45 }
  0x49   :  { %1747 = vmatprep.subr.bf16.mxu0 %v1905_v52  ;;  %1768 = vmatpush3.bf16.msra.mxu1 %v1904_v51  ;;  %v157_v51 = vpack.c.bf16 %v126_v42, %v126_v42  ;;  %v1934_v52 = vld [vmem:[%s2465_s1 + $0x3c8] sm:$0xff]  }
  0x4a   :  { %1769 = vmatprep.subr.bf16.mxu1 %v1906_v53  ;;  %v159_v53 = vpack.c.bf16 %v127_v49, %v127_v49  ;;  %1423 = vmatprep.mubr.bf16.mxu1 %v155_v50 }
  0x4c   :  { %1748 = vmatpush3.bf16.msra.mxu0 %v1907_v54  ;;  %v1935_v54 = vld [vmem:[%s2465_s1 + $0x308] sm:$0xff]  }
  0x4d   :  { %1749 = vmatprep.subr.bf16.mxu0 %v1909_v57  ;;  %1770 = vmatpush3.bf16.msra.mxu1 %v1908_v55  ;;  %v1937_v55 = vld [vmem:[%s2465_s1 + $0x350] sm:$0xff]   ;;  %v1936_v57 = vld [vmem:[%s2465_s1 + $0x388] sm:$0xff]  }
  0x4e   :  { %1771 = vmatprep.subr.bf16.mxu1 %v1910_v58  ;;  %v1938_v58 = vld [vmem:[%s2465_s1 + $0x3d0] sm:$0xff]  }
  0x50   :  { %1750 = vmatpush3.bf16.msra.mxu0 %v1911_v59  ;;  %v1939_v59 = vld [vmem:[%s2465_s1 + $0x310] sm:$0xff]  }
  0x51   :  { %1751 = vmatprep.subr.bf16.mxu0 %v1913_v61  ;;  %1772 = vmatpush3.bf16.msra.mxu1 %v1912_v60  ;;  %v1941_v60 = vld [vmem:[%s2465_s1 + $0x358] sm:$0xff]   ;;  %v1940_v61 = vld [vmem:[%s2465_s1 + $0x390] sm:$0xff]  }
  0x52   :  { %1773 = vmatprep.subr.bf16.mxu1 %v1914_v62  ;;  %v1942_v62 = vld [vmem:[%s2465_s1 + $0x3d8] sm:$0xff]  }
  0x54   :  { %1752 = vmatpush3.bf16.msra.mxu0 %v1915_v63  ;;  %v1943_v63 = vld [vmem:[%s2465_s1 + $0x318] sm:$0xff]  }
  0x55   :  { %1753 = vmatprep.subr.bf16.mxu0 %v1917_v1  ;;  %1774 = vmatpush3.bf16.msra.mxu1 %v1916_v0  ;;  %v1945_v0 = vld [vmem:[%s2465_s1 + $0x360] sm:$0xff]   ;;  %v1944_v1 = vld [vmem:[%s2465_s1 + $0x398] sm:$0xff]  }
  0x56   :  { %1775 = vmatprep.subr.bf16.mxu1 %v1918_v2  ;;  %v1946_v2 = vld [vmem:[%s2465_s1 + $0x3e0] sm:$0xff]  }
  0x58   :  { %1754 = vmatpush3.bf16.msra.mxu0 %v1919_v11 }
  0x59   :  { %1755 = vmatprep.subr.bf16.mxu0 %v1921_v14  ;;  %1776 = vmatpush3.bf16.msra.mxu1 %v1920_v19 }
  0x5a   :  { %1777 = vmatprep.subr.bf16.mxu1 %v1922_v20 }
  0x5c   :  { %1756 = vmatpush3.bf16.msra.mxu0 %v1923_v23 }
  0x5d   :  { %1757 = vmatprep.subr.bf16.mxu0 %v1925_v24  ;;  %1778 = vmatpush3.bf16.msra.mxu1 %v1924_v27 }
  0x5e   :  { %1779 = vmatprep.subr.bf16.mxu1 %v1926_v28 }
  0x60   :  { %1758 = vmatpush3.bf16.msra.mxu0 %v1927_v30 }
  0x61   :  { %1787 = vmatprep.subr.bf16.mxu0 %v1929_v34  ;;  %1780 = vmatpush3.bf16.msra.mxu1 %v1928_v35 }
  0x62   :  { %1809 = vmatprep.subr.bf16.mxu1 %v1930_v40 }
  0x63   :  { %1384 = vmatmul.mubr.bf16.vlgmr.msra.gmra.mrb[8].mxu0 %v152_v41 }
  0x64   :  { %1788 = vmatpush3.bf16.msra.mxu0 %v1931_v46  ;;  %1424 = vmatmul.mubr.bf16.vlgmr.msra.gmra.mrb[8].mxu1 %v154_v47 }
  0x65   :  { %1789 = vmatprep.subr.bf16.mxu0 %v1933_v48  ;;  %1810 = vmatpush3.bf16.msra.mxu1 %v1932_v56 }
  0x66   :  { %1463 = vmatprep.mubr.bf16.mxu0 %v157_v51  ;;  %1811 = vmatprep.subr.bf16.mxu1 %v1934_v52 }
  0x67   :  { %1503 = vmatprep.mubr.bf16.mxu1 %v159_v53 }
  0x68   :  { %1790 = vmatpush3.bf16.msra.mxu0 %v1935_v54 }
  0x69   :  { %1791 = vmatprep.subr.bf16.mxu0 %v1937_v55  ;;  %1812 = vmatpush3.bf16.msra.mxu1 %v1936_v57 }
  0x6a   :  { %1813 = vmatprep.subr.bf16.mxu1 %v1938_v58 }
  0x6c   :  { %1792 = vmatpush3.bf16.msra.mxu0 %v1939_v59 }
  0x6d   :  { %1793 = vmatprep.subr.bf16.mxu0 %v1941_v60  ;;  %1814 = vmatpush3.bf16.msra.mxu1 %v1940_v61 }
  0x6e   :  { %1815 = vmatprep.subr.bf16.mxu1 %v1942_v62 }
  0x70   :  { %1794 = vmatpush3.bf16.msra.mxu0 %v1943_v63 }
  0x71   :  { %1795 = vmatprep.subr.bf16.mxu0 %v1945_v0  ;;  %1816 = vmatpush3.bf16.msra.mxu1 %v1944_v1 }
  0x72   :  { %8 = vsyncpa [#allocation3], 0  ;;  %1817 = vmatprep.subr.bf16.mxu1 %v1946_v2  ;;  %v1950_v6 = vld [vmem:[%s2465_s1 + $0x3e8] sm:$0xff]   ;;  %v1953_v8 = vld [vmem:[%s2465_s1 + $0x370] sm:$0xff]   ;;  %v156_v17 = vpack.c.bf16 %v2342_v36, %v2342_v36  ;;  %v158_v18 = vpack.c.bf16 %v2351_v43, %v2351_v43 }
  0x73   :  { %v1951_v7 = vld [vmem:[%s2465_s1 + $0x328] sm:$0xff]   ;;  %v1954_v10 = vld [vmem:[%s2465_s1 + $0x3f0] sm:$0xff]   ;;  %v1957_v12 = vld [vmem:[%s2465_s1 + $0x378] sm:$0xff]  }
  0x74   :  { %1796 = vmatpush3.bf16.msra.mxu0 %v1947_v3  ;;  %v1952_v9 = vld [vmem:[%s2465_s1 + $0x3a8] sm:$0xff]   ;;  %v1955_v11 = vld [vmem:[%s2465_s1 + $0x330] sm:$0xff]   ;;  %v1958_v14 = vld [vmem:[%s2465_s1 + $0x3f8] sm:$0xff]  }
  0x75   :  { %1797 = vmatprep.subr.bf16.mxu0 %v1949_v4  ;;  %1818 = vmatpush3.bf16.msra.mxu1 %v1948_v5  ;;  %v1956_v13 = vld [vmem:[%s2465_s1 + $0x3b0] sm:$0xff]   ;;  %v1959_v15 = vld [vmem:[%s2465_s1 + $0x338] sm:$0xff]   ;;  %v1526_v20 = vld [vmem:[%s2466_s2] ss:$0 sm:$0xff] }
  0x76   :  { %1819 = vmatprep.subr.bf16.mxu1 %v1950_v6  ;;  %v1960_v16 = vld [vmem:[%s2465_s1 + $0x3b8] sm:$0xff]   ;;  %s1986_s1 = smov [#allocation2]  }
  0x77   :  { %s1518_s2 = sshll.u32 %s1986_s1, 4  ;;  %s1519_s2 = int_to_ptr.vmem [resolvable:$true] %s1518_s2 }
  0x78   :  { %1798 = vmatpush3.bf16.msra.mxu0 %v1951_v7  ;;  %s1961_s13 = scalar_lea.vmem %s1519_s2, 32  ;;  %p1966_p1 = scmp.lt.s32.totalorder %s1519_s2, %s1519_s2 }
  0x79   :  { %1799 = vmatprep.subr.bf16.mxu0 %v1953_v8  ;;  %1820 = vmatpush3.bf16.msra.mxu1 %v1952_v9  ;;  %p1962_p0 = scmp.ne.s32.totalorder %s1519_s2, %s1961_s13  ;;  %p1967_p2 = scmp.lt.s32.totalorder %s1961_s13, %s1961_s13 }
  0x7a   :  { %1821 = vmatprep.subr.bf16.mxu1 %v1954_v10 }
  0x7b   :  { %p1968_p3 = por %p1967_p2, %p1966_p1 }
  0x7c   :  { %1800 = vmatpush3.bf16.msra.mxu0 %v1955_v11 }
  0x7d   :  { %1801 = vmatprep.subr.bf16.mxu0 %v1957_v12  ;;  %1822 = vmatpush3.bf16.msra.mxu1 %v1956_v13  ;;  %p1969_p4 = pnand %p1968_p3, %p1962_p0 }
  0x7e   :  { %1823 = vmatprep.subr.bf16.mxu1 %v1958_v14 }
  0x80   :  { %1802 = vmatpush3.bf16.msra.mxu0 %v1959_v15 }
  0x81   :  { %1824 = vmatpush3.bf16.msra.mxu1 %v1960_v16 }
  0x83   :  { %1464 = vmatmul.mubr.bf16.vlgmr.msra.gmra.mrb[12].mxu0 %v156_v17 }
  0x84   :  { %1504 = vmatmul.mubr.bf16.vlgmr.msra.gmra.mrb[12].mxu1 %v158_v18 }
  0xf6   :  { %v1671_v19 = vpop.f32.mrb[0].mxu0 }
  0xf7   :  { %v1672_v21 = vpop.f32.mrb[1].mxu0  ;;  %v1693_v22 = vpop.f32.mrb[0].mxu1 }
  0xf8   :  { %v1673_v23 = vadd.f32 %v1672_v21, %v1671_v19  ;;  %v1674_v24 = vpop.f32.mrb[2].mxu0  ;;  %v1694_v25 = vpop.f32.mrb[1].mxu1 }
  0xf9   :  { %v1675_v26 = vpop.f32.mrb[3].mxu0  ;;  %v1695_v28 = vadd.f32 %v1694_v25, %v1693_v22  ;;  %v1696_v29 = vpop.f32.mrb[2].mxu1 }
  0xfa   :  { %v1226_v27 = vadd.f32 %v1673_v23, %v1526_v20  ;;  %v1697_v30 = vpop.f32.mrb[3].mxu1 }
  0xfc   :  { %v1266_v31 = vadd.f32 %v1695_v28, %v1226_v27 }
 0x116   :  { %v1715_v32 = vpop.f32.mrb[4].mxu0 }
 0x117   :  { %v1716_v33 = vpop.f32.mrb[5].mxu0  ;;  %v1737_v34 = vpop.f32.mrb[4].mxu1 }
 0x118   :  { %v1717_v35 = vadd.f32 %v1716_v33, %v1715_v32  ;;  %v1718_v36 = vpop.f32.mrb[6].mxu0  ;;  %v1738_v37 = vpop.f32.mrb[5].mxu1 }
 0x119   :  { %v1719_v38 = vpop.f32.mrb[7].mxu0  ;;  %v1739_v40 = vadd.f32 %v1738_v37, %v1737_v34  ;;  %v1740_v41 = vpop.f32.mrb[6].mxu1 }
 0x11a   :  { %v1306_v39 = vadd.f32 %v1717_v35, %v1266_v31  ;;  %v1741_v42 = vpop.f32.mrb[7].mxu1 }
 0x11c   :  { %v1346_v43 = vadd.f32 %v1739_v40, %v1306_v39 }
 0x136   :  { %v1759_v44 = vpop.f32.mrb[8].mxu0 }
 0x137   :  { %v1760_v45 = vpop.f32.mrb[9].mxu0  ;;  %v1781_v46 = vpop.f32.mrb[8].mxu1 }
 0x138   :  { %v1761_v47 = vadd.f32 %v1760_v45, %v1759_v44  ;;  %v1762_v48 = vpop.f32.mrb[10].mxu0  ;;  %v1782_v49 = vpop.f32.mrb[9].mxu1 }
 0x139   :  { %v1763_v50 = vpop.f32.mrb[11].mxu0  ;;  %v1783_v51 = vadd.f32 %v1782_v49, %v1781_v46  ;;  %v1784_v52 = vpop.f32.mrb[10].mxu1 }
 0x13a   :  { %v1386_v56 = vadd.f32 %v1761_v47, %v1346_v43  ;;  %v1785_v53 = vpop.f32.mrb[11].mxu1 }
 0x13c   :  { %v1426_v54 = vadd.f32 %v1783_v51, %v1386_v56 }
 0x156   :  { %v1803_v55 = vpop.f32.mrb[12].mxu0 }
 0x157   :  { %v1804_v57 = vpop.f32.mrb[13].mxu0  ;;  %v1825_v58 = vpop.f32.mrb[12].mxu1 }
 0x158   :  { %v1805_v59 = vadd.f32 %v1804_v57, %v1803_v55  ;;  %v1806_v60 = vpop.f32.mrb[14].mxu0  ;;  %v1826_v61 = vpop.f32.mrb[13].mxu1 }
 0x159   :  { %v1807_v62 = vpop.f32.mrb[15].mxu0  ;;  %v1827_v0 = vadd.f32 %v1826_v61, %v1825_v58  ;;  %v1828_v1 = vpop.f32.mrb[14].mxu1 }
 0x15a   :  { %v1466_v63 = vadd.f32 %v1805_v59, %v1426_v54  ;;  %v1829_v2 = vpop.f32.mrb[15].mxu1 }
 0x15c   :  { %v1506_v3 = vadd.f32 %v1827_v0, %v1466_v63 }
 0x15e   :  { %1511 = vst [vmem:[#allocation2] sm:$0x3] %v1506_v3 }
 0x15f   :  { %1972 = shalt.err (!%p1969_p4)
}
 0x160   :  { %s1973_s15 = scalar_lea.hbm %s2467_s3, 32 }
 0x161   :  { %p1974_p5 = scmp.ne.s32.totalorder %s2467_s3, %s1973_s15  ;;  %p1977_p6 = scmp.lt.u32.totalorder %s1973_s15, %s2467_s3 }
 0x163   :  { %p1979_p7 = pnand %p1977_p6, %p1974_p5 }
 0x165   :  { %1982 = shalt.err (!%p1979_p7)
}
 0x166   :  { %1521 = dma.vmem_to_hbm [thread:$0]  %s1519_s2, 32, %s2467_s3, [#allocation3]  }
 0x167   :  { %1983 = dma.done.wait [#allocation3], 32  }
 0x168   :  { %1984 = vsyncadd [#allocation3], 4294967264 }
 0x169   :  { %1525 = vsyncpa [#allocation3], 1 }

</bundles_post_ra>
